<compile_context>
chip_gen: v7x
topology: tpu7x:2x2x1
jax: 0.10.0
libtpu: 0.0.40
codegen_flags: <defaults>
</compile_context>

<pallas_src>
import functools

import jax
import jax.numpy as jnp
from jax import lax
from jax.experimental import pallas as pl
from jax.experimental.pallas import tpu as pltpu


def _round_up(x: int, m: int) -> int:
    return ((x + m - 1) // m) * m


def _cdiv(a: int, b: int) -> int:
    return (a + b - 1) // b


# --- single-buffering of grid-invariant operands ------------------------------
# Constant index_map => the operand is fetched once; a second pipeline buffer
# for it is pure VMEM waste.  Probe construction at import time; a lowering-time
# rejection is additionally handled by the runtime fallback in the wrapper.
try:
    pl.BlockSpec((8, 128), lambda i: (0, 0), pipeline_mode=pl.Buffered(1))
    _HAS_BUFFERED = True
except Exception:  # pragma: no cover - older/odd jax versions
    _HAS_BUFFERED = False
_SINGLE_BUF_OK = _HAS_BUFFERED


def _const_spec(shape, single_buf):
    """BlockSpec for a grid-invariant (weight/bias) operand."""
    if single_buf:
        return pl.BlockSpec(shape, lambda i: (0, 0), pipeline_mode=pl.Buffered(1))
    return pl.BlockSpec(shape, lambda i: (0, 0))


def _tpu_info():
    """(vmem_capacity_bytes, num_tensorcores) with conservative fallbacks."""
    vmem = 64 * 1024 * 1024   # v7x per-TC size: safe lower bound everywhere
    cores = 1                 # v5e/v6e have a single TensorCore
    try:
        info = pltpu.get_tpu_info()
        for name in ("vmem_capacity_bytes", "vmem_bytes", "vmem_size_bytes"):
            v = getattr(info, name, None)
            if isinstance(v, int) and v > 0:
                vmem = v
                break
        for name in ("num_cores", "core_count", "num_tensorcores",
                     "tensorcore_count"):
            c = getattr(info, name, None)
            if isinstance(c, int) and c > 0:
                cores = c
                break
    except Exception:
        pass
    return vmem, cores


def _choose_tile(B, D, H, block_b):
    """Generation-aware batch tile (multiple of 128, or exactly B for one step)."""
    vmem_cap, n_cores = _tpu_info()
    # Budget for the per-tile f32 h1/h2 intermediates + double-buffered x/out.
    budget = max(8 << 20, min(vmem_cap // 3, 32 << 20))
    per_col = 2 * H * 4 + 2 * D * 4 + 2 * 4
    max_tile = max(128, min(block_b, budget // per_col) // 128 * 128)
    if n_cores > 1 and B >= n_cores * 128:
        # Keep >= n_cores grid steps so the "parallel" batch axis can shard
        # across TensorCores (v7x megacore).  Pointless on single-TC v5e/v6e.
        max_tile = min(max_tile, _round_up(_cdiv(B, n_cores), 128))
    if B <= max_tile:
        tile = B  # one exact full-array block: no padding, no wasted compute
    else:
        # Balance tile size against round-up waste: derive the tile from the
        # number of steps instead of padding B up to a fixed large tile.
        n_steps = _cdiv(B, max_tile)
        tile = max(128, _round_up(_cdiv(B, n_steps), 128))
    return tile, vmem_cap


def _vmem_limit(tile, D, H, w_bytes, single_buf, vmem_cap):
    """Scoped-VMEM cap = estimated footprint + margin, <= 75% of capacity."""
    n_wbuf = 1 if single_buf else 2
    wb = n_wbuf * ((H * D + H * H) * w_bytes + (2 * H + H + 1) * 4)
    act = 2 * tile * D * 4 + 2 * tile * 4          # double-buffered x / out tiles
    tmp = 2 * H * tile * 4                          # h1, h2 f32 intermediates
    footprint = wb + act + tmp
    return int(min(max(2 * footprint + (8 << 20), 16 << 20),
                   vmem_cap * 3 // 4))


def _value_func_kernel(x_ref, w1_ref, b1_ref, w2_ref, b2_ref, w3_ref, b3_ref,
                       o_ref):
    """Fused 3-layer MLP forward for one batch tile (batch on the lane axis).

    x_ref : (TB, D) f32        w1_ref: (H, D) bf16   b1_ref: (H, 1) f32
                               w2_ref: (H, H) bf16   b2_ref: (H, 1) f32
                               w3_ref: (H, 1) f32    b3_ref: (1, 1) f32 (SMEM)
    o_ref : (1, TB) f32        (lane-dense output row)
    """
    x = x_ref[...].astype(w1_ref.dtype)             # cast once, on the VPU

    # Layer 1: contract the D axis of both (H, D) and (TB, D) -> (H, TB).
    # K = D under-fills the MXU but layer 2 dominates MXU time; keep it here.
    h1 = lax.dot_general(w1_ref[...], x, (((1,), (1,)), ((), ())),
                         preferred_element_type=jnp.float32)
    h1 = jnp.maximum(h1 + b1_ref[...], 0.0)         # bias + ReLU in f32 (VPU)

    # Layer 2: (H, H) @ (H, TB) -> (H, TB); bf16 MXU inputs, f32 accumulation.
    h2 = jnp.dot(w2_ref[...], h1.astype(w2_ref.dtype),
                 preferred_element_type=jnp.float32)
    h2 = jnp.maximum(h2 + b2_ref[...], 0.0)

    # Layer 3 (out_features == 1): VPU multiply + cross-sublane (XLU) reduce
    # instead of an N=1 MXU pass.  Result is already lane-dense.
    v = jnp.sum(h2 * w3_ref[...], axis=0, keepdims=True)          # (1, TB)
    o_ref[...] = (v + b3_ref[0, 0]).astype(o_ref.dtype)


@functools.partial(jax.jit, static_argnames=("tile", "single_buf", "vmem_limit"))
def _forward_impl(state, params, *, tile, single_buf, vmem_limit):
    B, D = state.shape
    H = params["w1"].shape[0]
    grid = (_cdiv(B, tile),)

    w1, b1 = params["w1"], params["b1"]
    w2, b2 = params["w2"], params["b2"]
    w3, b3 = params["w3"], params["b3"]

    cost = pl.CostEstimate(
        flops=2 * B * (D * H + H * H + H),
        transcendentals=0,
        bytes_accessed=int(state.size) * state.dtype.itemsize
        + sum(int(v.size) * v.dtype.itemsize for v in params.values())
        + B * 4)

    out = pl.pallas_call(
        _value_func_kernel,
        out_shape=jax.ShapeDtypeStruct((1, B), jnp.float32),
        grid_spec=pltpu.PrefetchScalarGridSpec(
            num_scalar_prefetch=0,
            grid=grid,
            in_specs=[
                pl.BlockSpec((tile, D), lambda i: (i, 0)),           # raw state tile
                _const_spec((H, D), single_buf),                     # w1
                _const_spec((H, 1), single_buf),                     # b1
                _const_spec((H, H), single_buf),                     # w2
                _const_spec((H, 1), single_buf),                     # b2
                _const_spec((H, 1), single_buf),                     # w3 (VPU)
                pl.BlockSpec(memory_space=pltpu.MemorySpace.SMEM),   # b3 scalar
            ],
            out_specs=pl.BlockSpec((1, tile), lambda i: (0, i)),     # lane-dense
        ),
        compiler_params=pltpu.CompilerParams(
            # NOTE(v7x): if profiling shows one idle TensorCore, switch this
            # axis to pltpu.CORE_PARALLEL / split explicitly with pl.core_map.
            dimension_semantics=("parallel",),
            vmem_limit_bytes=vmem_limit,
        ),
        cost_estimate=cost,
    )(state, w1, b1, w2, b2, w3, b3)

    # (1, B) -> (B, 1): identical memory order, free reshape (no HBM pass).
    return out.reshape(B, 1)


def value_func_forward(state, params, block_b=2048):
    """ValueFunc.forward(state) -> V(state), shape [B, 1], float32."""
    global _SINGLE_BUF_OK
    B, D = state.shape
    H = params["w1"].shape[0]
    w_bytes = params["w1"].dtype.itemsize
    tile, vmem_cap = _choose_tile(B, D, H, block_b)

    if _SINGLE_BUF_OK:
        try:
            return _forward_impl(
                state, params, tile=tile, single_buf=True,
                vmem_limit=_vmem_limit(tile, D, H, w_bytes, True, vmem_cap))
        except Exception:
            # pl.Buffered(1) rejected at lowering time on this jax build —
            # fall back to default double-buffering of the constants.
            _SINGLE_BUF_OK = False
    return _forward_impl(
        state, params, tile=tile, single_buf=False,
        vmem_limit=_vmem_limit(tile, D, H, w_bytes, False, vmem_cap))


def init_value_func_params(key, state_dim, hidden_size,
                           param_dtype=jnp.bfloat16):
    """PyTorch nn.Linear-style init: U(-1/sqrt(fan_in), 1/sqrt(fan_in)) for W, b.

    Weights stay in PyTorch's (out_features, in_features) layout.  w1/w2 are
    stored in `param_dtype` (bf16 by default for MXU-native matmuls — an
    intentional precision trade-off); biases and the 1-wide last layer are f32.
    """
    ks = jax.random.split(key, 6)

    def linear(kw, kb, fan_in, fan_out, w_dtype):
        bound = 1.0 / float(fan_in) ** 0.5
        w = jax.random.uniform(kw, (fan_out, fan_in), jnp.float32, -bound, bound)
        b = jax.random.uniform(kb, (fan_out, 1), jnp.float32, -bound, bound)
        return w.astype(w_dtype), b

    w1, b1 = linear(ks[0], ks[1], state_dim, hidden_size, param_dtype)
    w2, b2 = linear(ks[2], ks[3], hidden_size, hidden_size, param_dtype)
    w3, b3 = linear(ks[4], ks[5], hidden_size, 1, jnp.float32)
    return {"w1": w1, "b1": b1, "w2": w2, "b2": b2,
            "w3": w3.reshape(hidden_size, 1),   # column form, used on the VPU
            "b3": b3.reshape(1, 1)}


def _reference_forward(state, p):
    """Plain-JAX reference with the same dtype policy as the kernel."""
    cd = p["w1"].dtype
    h1 = jnp.dot(state.astype(cd), p["w1"].T,
                 preferred_element_type=jnp.float32) + p["b1"].reshape(1, -1)
    h1 = jnp.maximum(h1, 0.0)
    h2 = jnp.dot(h1.astype(cd), p["w2"].T,
                 preferred_element_type=jnp.float32) + p["b2"].reshape(1, -1)
    h2 = jnp.maximum(h2, 0.0)
    return h2 @ p["w3"] + p["b3"].reshape(1, 1)


if __name__ == "__main__":
    key = jax.random.PRNGKey(0)
    k_param, k_state = jax.random.split(key)

    # Small-scale stand-in for ValueFunc(state_dim, action_dim, hidden_size=256).
    batch, state_dim, hidden_size = 2, 16, 32
    params = init_value_func_params(k_param, state_dim, hidden_size)
    state = jax.random.normal(k_state, (batch, state_dim), jnp.float32)

    v = value_func_forward(state, params)
    jax.block_until_ready(v)
    v_ref = _reference_forward(state, params)
    assert v.shape == (batch, 1)
    assert bool(jnp.all(jnp.isfinite(v)))
    assert jnp.allclose(v, v_ref, atol=1e-2, rtol=1e-2)

    # Multi-step grid + ragged (non-multiple-of-128) batch path.
    k2, _ = jax.random.split(k_state)
    state2 = jax.random.normal(k2, (600, state_dim), jnp.float32)
    v2 = value_func_forward(state2, params, block_b=256)
    jax.block_until_ready(v2)
    v2_ref = _reference_forward(state2, params)
    assert v2.shape == (600, 1)
    assert bool(jnp.all(jnp.isfinite(v2)))
    assert jnp.allclose(v2, v2_ref, atol=1e-2, rtol=1e-2)

    print("KERNEL_OK")
</pallas_src>

<mosaic_0001>
module attributes {stable_mosaic.version = 11 : i64} {
  func.func @_value_func_kernel(%arg0: i32, %arg1: memref<2x16xf32, #tpu.memory_space<vmem>>, %arg2: memref<32x16xbf16, #tpu.memory_space<vmem>>, %arg3: memref<32x1xf32, #tpu.memory_space<vmem>>, %arg4: memref<32x32xbf16, #tpu.memory_space<vmem>>, %arg5: memref<32x1xf32, #tpu.memory_space<vmem>>, %arg6: memref<32x1xf32, #tpu.memory_space<vmem>>, %arg7: memref<1x1xf32, #tpu.memory_space<smem>>, %arg8: memref<1x2xf32, #tpu.memory_space<vmem>>) attributes {dimension_semantics = [#tpu.dimension_semantics<parallel>], iteration_bounds = array<i64: 1>, scalar_prefetch = 0 : i64, scratch_operands = 0 : i64, tpu.core_type = #tpu.core_type<tc>, window_params = [{transform_indices = @transform_0, window_bounds = array<i64: 2, 16>}, {pipeline_mode = #tpu.pipeline_mode<synchronous>, transform_indices = @transform_1, window_bounds = array<i64: 32, 16>}, {pipeline_mode = #tpu.pipeline_mode<synchronous>, transform_indices = @transform_2, window_bounds = array<i64: 32, 1>}, {pipeline_mode = #tpu.pipeline_mode<synchronous>, transform_indices = @transform_3, window_bounds = array<i64: 32, 32>}, {pipeline_mode = #tpu.pipeline_mode<synchronous>, transform_indices = @transform_4, window_bounds = array<i64: 32, 1>}, {pipeline_mode = #tpu.pipeline_mode<synchronous>, transform_indices = @transform_5, window_bounds = array<i64: 32, 1>}, {transform_indices = @transform_6, window_bounds = array<i64: 1, 1>}, {transform_indices = @transform_7, window_bounds = array<i64: 1, 2>}]} {
    %c0 = arith.constant 0 : index
    %c0_0 = arith.constant 0 : index
    %0 = vector.load %arg1[%c0, %c0_0] : memref<2x16xf32, #tpu.memory_space<vmem>>, vector<2x16xf32>
    %1 = arith.truncf %0 : vector<2x16xf32> to vector<2x16xbf16>
    %c0_1 = arith.constant 0 : index
    %c0_2 = arith.constant 0 : index
    %2 = vector.load %arg2[%c0_1, %c0_2] : memref<32x16xbf16, #tpu.memory_space<vmem>>, vector<32x16xbf16>
    %cst = arith.constant dense<0.000000e+00> : vector<32x2xf32>
    %3 = tpu.matmul %2, %1, %cst {dimension_numbers = #tpu.dot_dimension_numbers<[1], [1], [0], [0], [0, 0, 1, 0], [], []>} : vector<32x16xbf16>, vector<2x16xbf16>, vector<32x2xf32> -> vector<32x2xf32>
    %c0_3 = arith.constant 0 : index
    %c0_4 = arith.constant 0 : index
    %4 = vector.load %arg3[%c0_3, %c0_4] : memref<32x1xf32, #tpu.memory_space<vmem>>, vector<32x1xf32>
    %5 = vector.broadcast %4 : vector<32x1xf32> to vector<32x2xf32>
    %6 = arith.addf %3, %5 : vector<32x2xf32>
    %cst_5 = arith.constant 0.000000e+00 : f32
    %7 = vector.broadcast %cst_5 : f32 to vector<32x2xf32>
    %8 = arith.maximumf %6, %7 : vector<32x2xf32>
    %c0_6 = arith.constant 0 : index
    %c0_7 = arith.constant 0 : index
    %9 = vector.load %arg4[%c0_6, %c0_7] : memref<32x32xbf16, #tpu.memory_space<vmem>>, vector<32x32xbf16>
    %10 = arith.truncf %8 : vector<32x2xf32> to vector<32x2xbf16>
    %cst_8 = arith.constant dense<0.000000e+00> : vector<32x2xf32>
    %11 = tpu.matmul %9, %10, %cst_8 {dimension_numbers = #tpu.dot_dimension_numbers<[1], [0], [0], [1], [0, 0, 1, 1], [], []>} : vector<32x32xbf16>, vector<32x2xbf16>, vector<32x2xf32> -> vector<32x2xf32>
    %c0_9 = arith.constant 0 : index
    %c0_10 = arith.constant 0 : index
    %12 = vector.load %arg5[%c0_9, %c0_10] : memref<32x1xf32, #tpu.memory_space<vmem>>, vector<32x1xf32>
    %13 = vector.broadcast %12 : vector<32x1xf32> to vector<32x2xf32>
    %14 = arith.addf %11, %13 : vector<32x2xf32>
    %cst_11 = arith.constant 0.000000e+00 : f32
    %15 = vector.broadcast %cst_11 : f32 to vector<32x2xf32>
    %16 = arith.maximumf %14, %15 : vector<32x2xf32>
    %c0_12 = arith.constant 0 : index
    %c0_13 = arith.constant 0 : index
    %17 = vector.load %arg6[%c0_12, %c0_13] : memref<32x1xf32, #tpu.memory_space<vmem>>, vector<32x1xf32>
    %18 = vector.broadcast %17 : vector<32x1xf32> to vector<32x2xf32>
    %19 = arith.mulf %16, %18 : vector<32x2xf32>
    %cst_14 = arith.constant dense<0.000000e+00> : vector<2xf32>
    %20 = vector.multi_reduction <add>, %19, %cst_14 [0] : vector<32x2xf32> to vector<2xf32>
    %21 = vector.shape_cast %20 : vector<2xf32> to vector<1x2xf32>
    %c0_15 = arith.constant 0 : index
    %c0_16 = arith.constant 0 : index
    %22 = memref.load %arg7[%c0_15, %c0_16] : memref<1x1xf32, #tpu.memory_space<smem>>
    %23 = vector.broadcast %22 : f32 to vector<1x2xf32>
    %24 = arith.addf %21, %23 : vector<1x2xf32>
    %c0_17 = arith.constant 0 : index
    %c0_18 = arith.constant 0 : index
    %25 = vector.load %arg8[%c0_17, %c0_18] : memref<1x2xf32, #tpu.memory_space<vmem>>, vector<1x2xf32>
    tpu.vector_store %arg8[%c0_17, %c0_18], %24 {strides = array<i32>} : memref<1x2xf32, #tpu.memory_space<vmem>>, vector<1x2xf32>,
    return
  }
  func.func @transform_0(%arg0: i32) -> (i32, i32) {
    %c0_i32 = arith.constant 0 : i32
    %c0_i32_0 = arith.constant 0 : i32
    return %arg0, %c0_i32 : i32, i32
  }
  func.func @transform_1(%arg0: i32) -> (i32, i32) {
    %c0_i32 = arith.constant 0 : i32
    %c0_i32_0 = arith.constant 0 : i32
    %c0_i32_1 = arith.constant 0 : i32
    return %c0_i32, %c0_i32_0 : i32, i32
  }
  func.func @transform_2(%arg0: i32) -> (i32, i32) {
    %c0_i32 = arith.constant 0 : i32
    %c0_i32_0 = arith.constant 0 : i32
    %c0_i32_1 = arith.constant 0 : i32
    return %c0_i32, %c0_i32_0 : i32, i32
  }
  func.func @transform_3(%arg0: i32) -> (i32, i32) {
    %c0_i32 = arith.constant 0 : i32
    %c0_i32_0 = arith.constant 0 : i32
    %c0_i32_1 = arith.constant 0 : i32
    return %c0_i32, %c0_i32_0 : i32, i32
  }
  func.func @transform_4(%arg0: i32) -> (i32, i32) {
    %c0_i32 = arith.constant 0 : i32
    %c0_i32_0 = arith.constant 0 : i32
    %c0_i32_1 = arith.constant 0 : i32
    return %c0_i32, %c0_i32_0 : i32, i32
  }
  func.func @transform_5(%arg0: i32) -> (i32, i32) {
    %c0_i32 = arith.constant 0 : i32
    %c0_i32_0 = arith.constant 0 : i32
    %c0_i32_1 = arith.constant 0 : i32
    return %c0_i32, %c0_i32_0 : i32, i32
  }
  func.func @transform_6(%arg0: i32) -> (i32, i32) {
    %c0_i32 = arith.constant 0 : i32
    %c0_i32_0 = arith.constant 0 : i32
    %c0_i32_1 = arith.constant 0 : i32
    return %c0_i32, %c0_i32_0 : i32, i32
  }
  func.func @transform_7(%arg0: i32) -> (i32, i32) {
    %c0_i32 = arith.constant 0 : i32
    %c0_i32_0 = arith.constant 0 : i32
    return %c0_i32, %arg0 : i32, i32
  }
}

module attributes {stable_mosaic.version = 11 : i64} {
  func.func @_value_func_kernel(%arg0: i32, %arg1: memref<2x16xf32, #tpu.memory_space<vmem>>, %arg2: memref<32x16xbf16, #tpu.memory_space<vmem>>, %arg3: memref<32x1xf32, #tpu.memory_space<vmem>>, %arg4: memref<32x32xbf16, #tpu.memory_space<vmem>>, %arg5: memref<32x1xf32, #tpu.memory_space<vmem>>, %arg6: memref<32x1xf32, #tpu.memory_space<vmem>>, %arg7: memref<1x1xf32, #tpu.memory_space<smem>>, %arg8: memref<1x2xf32, #tpu.memory_space<vmem>>) attributes {dimension_semantics = [#tpu.dimension_semantics<parallel>], iteration_bounds = array<i64: 1>, scalar_prefetch = 0 : i64, scratch_operands = 0 : i64, tpu.core_type = #tpu.core_type<tc>, window_params = [{transform_indices = @transform_0, window_bounds = array<i64: 2, 16>}, {pipeline_mode = #tpu.pipeline_mode<synchronous>, transform_indices = @transform_1, window_bounds = array<i64: 32, 16>}, {pipeline_mode = #tpu.pipeline_mode<synchronous>, transform_indices = @transform_2, window_bounds = array<i64: 32, 1>}, {pipeline_mode = #tpu.pipeline_mode<synchronous>, transform_indices = @transform_3, window_bounds = array<i64: 32, 32>}, {pipeline_mode = #tpu.pipeline_mode<synchronous>, transform_indices = @transform_4, window_bounds = array<i64: 32, 1>}, {pipeline_mode = #tpu.pipeline_mode<synchronous>, transform_indices = @transform_5, window_bounds = array<i64: 32, 1>}, {transform_indices = @transform_6, window_bounds = array<i64: 1, 1>}, {transform_indices = @transform_7, window_bounds = array<i64: 1, 2>}]} {
    %c0 = arith.constant 0 : index
    %c0_0 = arith.constant 0 : index
    %0 = vector.load %arg1[%c0, %c0_0] : memref<2x16xf32, #tpu.memory_space<vmem>>, vector<2x16xf32>
    %1 = arith.truncf %0 : vector<2x16xf32> to vector<2x16xbf16>
    %c0_1 = arith.constant 0 : index
    %c0_2 = arith.constant 0 : index
    %2 = vector.load %arg2[%c0_1, %c0_2] : memref<32x16xbf16, #tpu.memory_space<vmem>>, vector<32x16xbf16>
    %cst = arith.constant dense<0.000000e+00> : vector<32x2xf32>
    %3 = tpu.matmul %2, %1, %cst {dimension_numbers = #tpu.dot_dimension_numbers<[1], [1], [0], [0], [0, 0, 1, 0], [], []>} : vector<32x16xbf16>, vector<2x16xbf16>, vector<32x2xf32> -> vector<32x2xf32>
    %c0_3 = arith.constant 0 : index
    %c0_4 = arith.constant 0 : index
    %4 = vector.load %arg3[%c0_3, %c0_4] : memref<32x1xf32, #tpu.memory_space<vmem>>, vector<32x1xf32>
    %5 = vector.broadcast %4 : vector<32x1xf32> to vector<32x2xf32>
    %6 = arith.addf %3, %5 : vector<32x2xf32>
    %cst_5 = arith.constant 0.000000e+00 : f32
    %7 = vector.broadcast %cst_5 : f32 to vector<32x2xf32>
    %8 = arith.maximumf %6, %7 : vector<32x2xf32>
    %c0_6 = arith.constant 0 : index
    %c0_7 = arith.constant 0 : index
    %9 = vector.load %arg4[%c0_6, %c0_7] : memref<32x32xbf16, #tpu.memory_space<vmem>>, vector<32x32xbf16>
    %10 = arith.truncf %8 : vector<32x2xf32> to vector<32x2xbf16>
    %cst_8 = arith.constant dense<0.000000e+00> : vector<32x2xf32>
    %11 = tpu.matmul %9, %10, %cst_8 {dimension_numbers = #tpu.dot_dimension_numbers<[1], [0], [0], [1], [0, 0, 1, 1], [], []>} : vector<32x32xbf16>, vector<32x2xbf16>, vector<32x2xf32> -> vector<32x2xf32>
    %c0_9 = arith.constant 0 : index
    %c0_10 = arith.constant 0 : index
    %12 = vector.load %arg5[%c0_9, %c0_10] : memref<32x1xf32, #tpu.memory_space<vmem>>, vector<32x1xf32>
    %13 = vector.broadcast %12 : vector<32x1xf32> to vector<32x2xf32>
    %14 = arith.addf %11, %13 : vector<32x2xf32>
    %cst_11 = arith.constant 0.000000e+00 : f32
    %15 = vector.broadcast %cst_11 : f32 to vector<32x2xf32>
    %16 = arith.maximumf %14, %15 : vector<32x2xf32>
    %c0_12 = arith.constant 0 : index
    %c0_13 = arith.constant 0 : index
    %17 = vector.load %arg6[%c0_12, %c0_13] : memref<32x1xf32, #tpu.memory_space<vmem>>, vector<32x1xf32>
    %18 = vector.broadcast %17 : vector<32x1xf32> to vector<32x2xf32>
    %19 = arith.mulf %16, %18 : vector<32x2xf32>
    %cst_14 = arith.constant dense<0.000000e+00> : vector<2xf32>
    %20 = vector.multi_reduction <add>, %19, %cst_14 [0] : vector<32x2xf32> to vector<2xf32>
    %21 = vector.shape_cast %20 : vector<2xf32> to vector<1x2xf32>
    %c0_15 = arith.constant 0 : index
    %c0_16 = arith.constant 0 : index
    %22 = memref.load %arg7[%c0_15, %c0_16] : memref<1x1xf32, #tpu.memory_space<smem>>
    %23 = vector.broadcast %22 : f32 to vector<1x2xf32>
    %24 = arith.addf %21, %23 : vector<1x2xf32>
    %c0_17 = arith.constant 0 : index
    %c0_18 = arith.constant 0 : index
    %25 = vector.load %arg8[%c0_17, %c0_18] : memref<1x2xf32, #tpu.memory_space<vmem>>, vector<1x2xf32>
    tpu.vector_store %arg8[%c0_17, %c0_18], %24 {strides = array<i32>} : memref<1x2xf32, #tpu.memory_space<vmem>>, vector<1x2xf32>,
    return
  }
  func.func @transform_0(%arg0: i32) -> (i32, i32) {
    %c0_i32 = arith.constant 0 : i32
    %c0_i32_0 = arith.constant 0 : i32
    return %arg0, %c0_i32 : i32, i32
  }
  func.func @transform_1(%arg0: i32) -> (i32, i32) {
    %c0_i32 = arith.constant 0 : i32
    %c0_i32_0 = arith.constant 0 : i32
    %c0_i32_1 = arith.constant 0 : i32
    return %c0_i32, %c0_i32_0 : i32, i32
  }
  func.func @transform_2(%arg0: i32) -> (i32, i32) {
    %c0_i32 = arith.constant 0 : i32
    %c0_i32_0 = arith.constant 0 : i32
    %c0_i32_1 = arith.constant 0 : i32
    return %c0_i32, %c0_i32_0 : i32, i32
  }
  func.func @transform_3(%arg0: i32) -> (i32, i32) {
    %c0_i32 = arith.constant 0 : i32
    %c0_i32_0 = arith.constant 0 : i32
    %c0_i32_1 = arith.constant 0 : i32
    return %c0_i32, %c0_i32_0 : i32, i32
  }
  func.func @transform_4(%arg0: i32) -> (i32, i32) {
    %c0_i32 = arith.constant 0 : i32
    %c0_i32_0 = arith.constant 0 : i32
    %c0_i32_1 = arith.constant 0 : i32
    return %c0_i32, %c0_i32_0 : i32, i32
  }
  func.func @transform_5(%arg0: i32) -> (i32, i32) {
    %c0_i32 = arith.constant 0 : i32
    %c0_i32_0 = arith.constant 0 : i32
    %c0_i32_1 = arith.constant 0 : i32
    return %c0_i32, %c0_i32_0 : i32, i32
  }
  func.func @transform_6(%arg0: i32) -> (i32, i32) {
    %c0_i32 = arith.constant 0 : i32
    %c0_i32_0 = arith.constant 0 : i32
    %c0_i32_1 = arith.constant 0 : i32
    return %c0_i32, %c0_i32_0 : i32, i32
  }
  func.func @transform_7(%arg0: i32) -> (i32, i32) {
    %c0_i32 = arith.constant 0 : i32
    %c0_i32_0 = arith.constant 0 : i32
    return %c0_i32, %arg0 : i32, i32
  }
}

</mosaic_0001>

<bundles_post_ra>
// kernel: _forward_impl.1
= control target key start
LH: loop header
LB: loop body
LE: loop exit
PB: predicated region body
PF: predicated region fallthrough
CT: control target
= control target key end

     0   :  { %vm69_vm0 = vcmask 130048   ;;  %v355_v5 = vmov 0   ;;  %s469_s0 = inlined_call_operand.vmem [shape: f32[2,16], index: 0, kind: input, shape index: {}]   ;;  %s470_s1 = inlined_call_operand.vmem [shape: bf16[32,16], index: 1, kind: input, shape index: {}]   ;;  %s471_s2 = inlined_call_operand.vmem [shape: f32[32,1], index: 2, kind: input, shape index: {}]   ;;  %s472_s3 = inlined_call_operand.vmem [shape: bf16[32,32], index: 3, kind: input, shape index: {}]   ;;  %s473_s4 = inlined_call_operand.vmem [shape: f32[32,1], index: 4, kind: input, shape index: {}]   ;;  %s474_s5 = inlined_call_operand.vmem [shape: f32[32,1], index: 5, kind: input, shape index: {}]   ;;  %s475_s6 = inlined_call_operand.<no memory space> [shape: f32[1,1], index: 6, kind: input, shape index: {}]   ;;  %s476_s7 = inlined_call_operand.hbm [shape: f32[1,2], index: 7, kind: output, shape index: {}]  }
   0x1   :  { %v29_v0 = vld [vmem:[%s469_s0] sm:$0x3]  ;;  %325 = vset.pattern.permute.xlu0 %v355_v5  ;;  %v37_v6 = vld [vmem:[%s471_s2 + $0x10] sm:$0xff]  ;;  %v328_v7 = vld [vmem:[%s470_s1 + $0x8] sm:$0xff]   ;;  %326 = vset.pattern.permute.xlu1 %v355_v5 }
   0x2   :  { %v327_v1 = vld [vmem:[%s470_s1] sm:$0xff]   ;;  %v30_v2 = vpack.c.bf16 %v29_v0, %v29_v0  ;;  %v36_v8 = vld [vmem:[%s471_s2 + $0x8] sm:$0xff]  ;;  %51 = vperm.xlu1 %326, %v37_v6   ;;  %v38_v9 = vld [vmem:[%s471_s2 + $0x18] sm:$0xff] }
   0x3   :  { %310 = vmatprep.mubr.msk.bf16.mxu0 %vm69_vm0, %v327_v1  ;;  %v35_v3 = vld [vmem:[%s471_s2] sm:$0xff] }
   0x4   :  { %322 = vmatprep.subr.msk.bf16.mxu0 %vm69_vm0, %v30_v2  ;;  %v77_v4 = vsel %vm69_vm0, %v30_v2, 0  ;;  %41 = vperm.xlu0 %325, %v35_v3  }
   0x5   :  { %309 = vmatpush3.bf16.xpose.msra.mxu0 %v77_v4 }
   0x6   :  { %13 = vsyncpa [#allocation4], 0  ;;  %v138_v10 = vld [vmem:[%s473_s4] sm:$0xff]  ;;  %56 = vperm.xlu1 %326, %v38_v9   ;;  %v139_v11 = vld [vmem:[%s473_s4 + $0x8] sm:$0xff]  ;;  %vm172_vm1 = vcmask 261120   ;;  %vm260_vm2 = vcmask 15360  }
   0x7   :  { %v140_v12 = vld [vmem:[%s473_s4 + $0x10] sm:$0xff]  ;;  %v141_v13 = vld [vmem:[%s473_s4 + $0x18] sm:$0xff]  ;;  %v232_v14 = vld [vmem:[%s474_s5] sm:$0xff]  ;;  %s356_s0 = smov [#allocation3]   ;;  %vm277_vm3 = vcmask 8192  }
   0x8   :  { %46 = vperm.xlu0 %325, %v36_v8   ;;  %v233_v15 = vld [vmem:[%s474_s5 + $0x8] sm:$0xff]  ;;  %v234_v16 = vld [vmem:[%s474_s5 + $0x10] sm:$0xff]  ;;  %v235_v17 = vld [vmem:[%s474_s5 + $0x18] sm:$0xff]  ;;  %s285_s8 = sshll.u32 %s356_s0, 4  ;;  %s286_s8 = int_to_ptr.vmem [resolvable:$true] %s285_s8 }
   0x9   :  { %v329_v18 = vld [vmem:[%s472_s3] sm:$0xff]   ;;  %v330_v37 = vld [vmem:[%s472_s3 + $0x8] sm:$0xff]   ;;  %s331_s9 = scalar_lea.vmem %s286_s8, 16  ;;  %s335_s10 = scalar_lea.vmem %s286_s8, 32 }
   0xa   :  { %149 = vperm.xlu1 %326, %v139_v11   ;;  %318 = vmatprep.mubr.msk.bf16.mxu1 %vm172_vm1, %v329_v18  ;;  %p332_p0 = scmp.ne.s32.totalorder %s286_s8, %s331_s9  ;;  %p336_p1 = scmp.lt.s32.totalorder %s286_s8, %s286_s8 }
   0xb   :  { %p337_p2 = scmp.lt.s32.totalorder %s335_s10, %s331_s9 }
   0xc   :  { %311 = vmatmul.mubr.msk.bf16.vlgmr.msra.gmra.mrb[0].mxu0 %vm69_vm0, %v328_v7  ;;  %144 = vperm.xlu0 %325, %v138_v10   ;;  %v275_v10 = vstv %s475_s6 }
   0xd   :  { %p338_p3 = por %p337_p2, %p336_p1 }
   0xe   :  { %159 = vperm.xlu1 %326, %v141_v13  }
   0xf   :  { %p339_p4 = pnand %p338_p3, %p332_p0 }
  0x10   :  { %154 = vperm.xlu0 %325, %v140_v12  }
  0x12   :  { %243 = vperm.xlu1 %326, %v233_v15  }
  0x14   :  { %238 = vperm.xlu0 %325, %v232_v14  }
  0x16   :  { %253 = vperm.xlu1 %326, %v235_v17  }
  0x18   :  { %248 = vperm.xlu0 %325, %v234_v16  }
  0x81   :  { %v52_v19 = vpop.permute.xlu1 %51 }
  0x83   :  { %v42_v20 = vpop.permute.xlu0 %41 }
  0x85   :  { %v57_v24 = vpop.permute.xlu1 %56 }
  0x87   :  { %v47_v27 = vpop.permute.xlu0 %46 }
  0x89   :  { %v150_v39 = vpop.permute.xlu1 %149 }
  0x8b   :  { %v145_v38 = vpop.permute.xlu0 %144 }
  0x8d   :  { %v160_v41 = vpop.permute.xlu1 %159 }
  0x8f   :  { %v155_v40 = vpop.permute.xlu0 %154 }
  0x91   :  { %v244_v48 = vpop.permute.xlu1 %243 }
  0x93   :  { %v239_v43 = vpop.permute.xlu0 %238 }
  0x95   :  { %v254_v60 = vpop.permute.xlu1 %253 }
  0x97   :  { %v249_v57 = vpop.permute.xlu0 %248 }
  0xdf   :  { %v312_v21 = vpop.f32.mrb[0].mxu0 }
  0xe0   :  { %v122_v22 = vadd.f32 %v312_v21, %v52_v19  ;;  %v113_v23 = vpop.f32.mrb[1].mxu0 }
  0xe1   :  { %v114_v25 = vadd.f32 %v113_v23, %v42_v20  ;;  %v313_v26 = vpop.f32.mrb[2].mxu0 }
  0xe2   :  { %v125_v28 = vadd.f32 %v313_v26, %v57_v24  ;;  %v116_v29 = vpop.f32.mrb[3].mxu0  ;;  %v130_v31 = vmax.f32 %v122_v22, 0.0 }
  0xe3   :  { %v117_v30 = vadd.f32 %v116_v29, %v47_v27  ;;  %v128_v33 = vmax.f32 %v114_v25, 0.0 }
  0xe4   :  { %v131_v32 = vmax.f32 %v125_v28, 0.0 }
  0xe5   :  { %v129_v34 = vmax.f32 %v117_v30, 0.0 }
  0xe6   :  { %v137_v35 = vpack.c.bf16 %v131_v32, %v130_v31 }
  0xe7   :  { %v136_v36 = vpack.c.bf16 %v129_v34, %v128_v33 }
  0xe9   :  { %314 = vmatprep.subr.bf16.mxu1 %v136_v36 }
  0xea   :  { %315 = vmatpush3.bf16.msra.mxu1 %v136_v36 }
  0xeb   :  { %316 = vmatprep.subr.bf16.mxu1 %v137_v35 }
  0xee   :  { %317 = vmatpush3.bf16.msra.mxu1 %v137_v35 }
  0xf1   :  { %319 = vmatmul.mubr.msk.bf16.vlgmr.msra.gmra.mrb[0].mxu1 %vm172_vm1, %v330_v37 }
 0x1c4   :  { %v320_v42 = vpop.f32.mrb[0].mxu1 }
 0x1c5   :  { %v222_v44 = vadd.f32 %v320_v42, %v155_v40  ;;  %v213_v45 = vpop.f32.mrb[1].mxu1 }
 0x1c6   :  { %v214_v46 = vadd.f32 %v213_v45, %v145_v38  ;;  %v321_v47 = vpop.f32.mrb[2].mxu1 }
 0x1c7   :  { %v225_v49 = vadd.f32 %v321_v47, %v160_v41  ;;  %v216_v50 = vpop.f32.mrb[3].mxu1  ;;  %v230_v51 = vmax.f32 %v222_v44, 0.0 }
 0x1c8   :  { %v228_v52 = vmax.f32 %v214_v46, 0.0  ;;  %v217_v53 = vadd.f32 %v216_v50, %v150_v39 }
 0x1c9   :  { %v231_v55 = vmax.f32 %v225_v49, 0.0  ;;  %v258_v58 = vmul.f32 %v249_v57, %v230_v51 }
 0x1ca   :  { %v256_v54 = vmul.f32 %v239_v43, %v228_v52  ;;  %v229_v56 = vmax.f32 %v217_v53, 0.0 }
 0x1cb   :  { %v259_v62 = vmul.f32 %v254_v60, %v231_v55  ;;  %v264_v1 = vsel %vm260_vm2, %v258_v58, 0.0 }
 0x1cc   :  { %v257_v59 = vmul.f32 %v244_v48, %v229_v56  ;;  %v261_v61 = vsel %vm260_vm2, %v256_v54, 0.0 }
 0x1cd   :  { %v266_v3 = vsel %vm260_vm2, %v259_v62, 0.0 }
 0x1ce   :  { %v262_v63 = vsel %vm260_vm2, %v257_v59, 0.0 }
 0x1cf   :  { %v263_v0 = vadd.f32 %v262_v63, %v261_v61 }
 0x1d1   :  { %v265_v2 = vadd.f32 %v264_v1, %v263_v0 }
 0x1d3   :  { %v267_v4 = vadd.f32 %v266_v3, %v265_v2 }
 0x1d5   :  { %v268_v5 = vrot.slane %v267_v4, 4 }
 0x1d7   :  { %v269_v6 = vadd.f32 %v268_v5, %v267_v4 }
 0x1d9   :  { %v270_v7 = vrot.slane %v269_v6, 2 }
 0x1db   :  { %v271_v8 = vadd.f32 %v270_v7, %v269_v6 }
 0x1dd   :  { %v272_v9 = vrot.slane %v271_v8, 1 }
 0x1df   :  { %v273_v11 = vadd.f32 %v272_v9, %v271_v8 }
 0x1e1   :  { %v276_v12 = vadd.f32 %v275_v10, %v273_v11 }
 0x1e3   :  { %278 = vst.msk [vmem:[#allocation3] sm:$0x1] %vm277_vm3, %v276_v12 }
 0x1e4   :  { %342 = shalt.err (!%p339_p4)
}
 0x1e5   :  { %s343_s13 = scalar_lea.hbm %s476_s7, 16 }
 0x1e6   :  { %p344_p5 = scmp.ne.s32.totalorder %s476_s7, %s343_s13  ;;  %p347_p6 = scmp.lt.u32.totalorder %s343_s13, %s476_s7 }
 0x1e8   :  { %p349_p7 = pnand %p347_p6, %p344_p5 }
 0x1ea   :  { %352 = shalt.err (!%p349_p7)
}
 0x1eb   :  { %288 = dma.vmem_to_hbm [thread:$0]  %s286_s8, 16, %s476_s7, [#allocation4]  }
 0x1ec   :  { %353 = dma.done.wait [#allocation4], 16  }
 0x1ed   :  { %354 = vsyncadd [#allocation4], 4294967280 }
 0x1ee   :  { %292 = vsyncpa [#allocation4], 1 }

// kernel: _forward_impl.1
= control target key start
LH: loop header
LB: loop body
LE: loop exit
PB: predicated region body
PF: predicated region fallthrough
CT: control target
= control target key end

     0   :  { %vm69_vm0 = vcmask 130048   ;;  %v355_v5 = vmov 0   ;;  %s469_s0 = inlined_call_operand.vmem [shape: f32[2,16], index: 0, kind: input, shape index: {}]   ;;  %s470_s1 = inlined_call_operand.vmem [shape: bf16[32,16], index: 1, kind: input, shape index: {}]   ;;  %s471_s2 = inlined_call_operand.vmem [shape: f32[32,1], index: 2, kind: input, shape index: {}]   ;;  %s472_s3 = inlined_call_operand.vmem [shape: bf16[32,32], index: 3, kind: input, shape index: {}]   ;;  %s473_s4 = inlined_call_operand.vmem [shape: f32[32,1], index: 4, kind: input, shape index: {}]   ;;  %s474_s5 = inlined_call_operand.vmem [shape: f32[32,1], index: 5, kind: input, shape index: {}]   ;;  %s475_s6 = inlined_call_operand.<no memory space> [shape: f32[1,1], index: 6, kind: input, shape index: {}]   ;;  %s476_s7 = inlined_call_operand.hbm [shape: f32[1,2], index: 7, kind: output, shape index: {}]  }
   0x1   :  { %v29_v0 = vld [vmem:[%s469_s0] sm:$0x3]  ;;  %325 = vset.pattern.permute.xlu0 %v355_v5  ;;  %v37_v6 = vld [vmem:[%s471_s2 + $0x10] sm:$0xff]  ;;  %v328_v7 = vld [vmem:[%s470_s1 + $0x8] sm:$0xff]   ;;  %326 = vset.pattern.permute.xlu1 %v355_v5 }
   0x2   :  { %v327_v1 = vld [vmem:[%s470_s1] sm:$0xff]   ;;  %v30_v2 = vpack.c.bf16 %v29_v0, %v29_v0  ;;  %v36_v8 = vld [vmem:[%s471_s2 + $0x8] sm:$0xff]  ;;  %51 = vperm.xlu1 %326, %v37_v6   ;;  %v38_v9 = vld [vmem:[%s471_s2 + $0x18] sm:$0xff] }
   0x3   :  { %310 = vmatprep.mubr.msk.bf16.mxu0 %vm69_vm0, %v327_v1  ;;  %v35_v3 = vld [vmem:[%s471_s2] sm:$0xff] }
   0x4   :  { %322 = vmatprep.subr.msk.bf16.mxu0 %vm69_vm0, %v30_v2  ;;  %v77_v4 = vsel %vm69_vm0, %v30_v2, 0  ;;  %41 = vperm.xlu0 %325, %v35_v3  }
   0x5   :  { %309 = vmatpush3.bf16.xpose.msra.mxu0 %v77_v4 }
   0x6   :  { %13 = vsyncpa [#allocation4], 0  ;;  %v138_v10 = vld [vmem:[%s473_s4] sm:$0xff]  ;;  %56 = vperm.xlu1 %326, %v38_v9   ;;  %v139_v11 = vld [vmem:[%s473_s4 + $0x8] sm:$0xff]  ;;  %vm172_vm1 = vcmask 261120   ;;  %vm260_vm2 = vcmask 15360  }
   0x7   :  { %v140_v12 = vld [vmem:[%s473_s4 + $0x10] sm:$0xff]  ;;  %v141_v13 = vld [vmem:[%s473_s4 + $0x18] sm:$0xff]  ;;  %v232_v14 = vld [vmem:[%s474_s5] sm:$0xff]  ;;  %s356_s0 = smov [#allocation3]   ;;  %vm277_vm3 = vcmask 8192  }
   0x8   :  { %46 = vperm.xlu0 %325, %v36_v8   ;;  %v233_v15 = vld [vmem:[%s474_s5 + $0x8] sm:$0xff]  ;;  %v234_v16 = vld [vmem:[%s474_s5 + $0x10] sm:$0xff]  ;;  %v235_v17 = vld [vmem:[%s474_s5 + $0x18] sm:$0xff]  ;;  %s285_s8 = sshll.u32 %s356_s0, 4  ;;  %s286_s8 = int_to_ptr.vmem [resolvable:$true] %s285_s8 }
   0x9   :  { %v329_v18 = vld [vmem:[%s472_s3] sm:$0xff]   ;;  %v330_v37 = vld [vmem:[%s472_s3 + $0x8] sm:$0xff]   ;;  %s331_s9 = scalar_lea.vmem %s286_s8, 16  ;;  %s335_s10 = scalar_lea.vmem %s286_s8, 32 }
   0xa   :  { %149 = vperm.xlu1 %326, %v139_v11   ;;  %318 = vmatprep.mubr.msk.bf16.mxu1 %vm172_vm1, %v329_v18  ;;  %p332_p0 = scmp.ne.s32.totalorder %s286_s8, %s331_s9  ;;  %p336_p1 = scmp.lt.s32.totalorder %s286_s8, %s286_s8 }
   0xb   :  { %p337_p2 = scmp.lt.s32.totalorder %s335_s10, %s331_s9 }
   0xc   :  { %311 = vmatmul.mubr.msk.bf16.vlgmr.msra.gmra.mrb[0].mxu0 %vm69_vm0, %v328_v7  ;;  %144 = vperm.xlu0 %325, %v138_v10   ;;  %v275_v10 = vstv %s475_s6 }
   0xd   :  { %p338_p3 = por %p337_p2, %p336_p1 }
   0xe   :  { %159 = vperm.xlu1 %326, %v141_v13  }
   0xf   :  { %p339_p4 = pnand %p338_p3, %p332_p0 }
  0x10   :  { %154 = vperm.xlu0 %325, %v140_v12  }
  0x12   :  { %243 = vperm.xlu1 %326, %v233_v15  }
  0x14   :  { %238 = vperm.xlu0 %325, %v232_v14  }
  0x16   :  { %253 = vperm.xlu1 %326, %v235_v17  }
  0x18   :  { %248 = vperm.xlu0 %325, %v234_v16  }
  0x81   :  { %v52_v19 = vpop.permute.xlu1 %51 }
  0x83   :  { %v42_v20 = vpop.permute.xlu0 %41 }
  0x85   :  { %v57_v24 = vpop.permute.xlu1 %56 }
  0x87   :  { %v47_v27 = vpop.permute.xlu0 %46 }
  0x89   :  { %v150_v39 = vpop.permute.xlu1 %149 }
  0x8b   :  { %v145_v38 = vpop.permute.xlu0 %144 }
  0x8d   :  { %v160_v41 = vpop.permute.xlu1 %159 }
  0x8f   :  { %v155_v40 = vpop.permute.xlu0 %154 }
  0x91   :  { %v244_v48 = vpop.permute.xlu1 %243 }
  0x93   :  { %v239_v43 = vpop.permute.xlu0 %238 }
  0x95   :  { %v254_v60 = vpop.permute.xlu1 %253 }
  0x97   :  { %v249_v57 = vpop.permute.xlu0 %248 }
  0xdf   :  { %v312_v21 = vpop.f32.mrb[0].mxu0 }
  0xe0   :  { %v122_v22 = vadd.f32 %v312_v21, %v52_v19  ;;  %v113_v23 = vpop.f32.mrb[1].mxu0 }
  0xe1   :  { %v114_v25 = vadd.f32 %v113_v23, %v42_v20  ;;  %v313_v26 = vpop.f32.mrb[2].mxu0 }
  0xe2   :  { %v125_v28 = vadd.f32 %v313_v26, %v57_v24  ;;  %v116_v29 = vpop.f32.mrb[3].mxu0  ;;  %v130_v31 = vmax.f32 %v122_v22, 0.0 }
  0xe3   :  { %v117_v30 = vadd.f32 %v116_v29, %v47_v27  ;;  %v128_v33 = vmax.f32 %v114_v25, 0.0 }
  0xe4   :  { %v131_v32 = vmax.f32 %v125_v28, 0.0 }
  0xe5   :  { %v129_v34 = vmax.f32 %v117_v30, 0.0 }
  0xe6   :  { %v137_v35 = vpack.c.bf16 %v131_v32, %v130_v31 }
  0xe7   :  { %v136_v36 = vpack.c.bf16 %v129_v34, %v128_v33 }
  0xe9   :  { %314 = vmatprep.subr.bf16.mxu1 %v136_v36 }
  0xea   :  { %315 = vmatpush3.bf16.msra.mxu1 %v136_v36 }
  0xeb   :  { %316 = vmatprep.subr.bf16.mxu1 %v137_v35 }
  0xee   :  { %317 = vmatpush3.bf16.msra.mxu1 %v137_v35 }
  0xf1   :  { %319 = vmatmul.mubr.msk.bf16.vlgmr.msra.gmra.mrb[0].mxu1 %vm172_vm1, %v330_v37 }
 0x1c4   :  { %v320_v42 = vpop.f32.mrb[0].mxu1 }
 0x1c5   :  { %v222_v44 = vadd.f32 %v320_v42, %v155_v40  ;;  %v213_v45 = vpop.f32.mrb[1].mxu1 }
 0x1c6   :  { %v214_v46 = vadd.f32 %v213_v45, %v145_v38  ;;  %v321_v47 = vpop.f32.mrb[2].mxu1 }
 0x1c7   :  { %v225_v49 = vadd.f32 %v321_v47, %v160_v41  ;;  %v216_v50 = vpop.f32.mrb[3].mxu1  ;;  %v230_v51 = vmax.f32 %v222_v44, 0.0 }
 0x1c8   :  { %v228_v52 = vmax.f32 %v214_v46, 0.0  ;;  %v217_v53 = vadd.f32 %v216_v50, %v150_v39 }
 0x1c9   :  { %v231_v55 = vmax.f32 %v225_v49, 0.0  ;;  %v258_v58 = vmul.f32 %v249_v57, %v230_v51 }
 0x1ca   :  { %v256_v54 = vmul.f32 %v239_v43, %v228_v52  ;;  %v229_v56 = vmax.f32 %v217_v53, 0.0 }
 0x1cb   :  { %v259_v62 = vmul.f32 %v254_v60, %v231_v55  ;;  %v264_v1 = vsel %vm260_vm2, %v258_v58, 0.0 }
 0x1cc   :  { %v257_v59 = vmul.f32 %v244_v48, %v229_v56  ;;  %v261_v61 = vsel %vm260_vm2, %v256_v54, 0.0 }
 0x1cd   :  { %v266_v3 = vsel %vm260_vm2, %v259_v62, 0.0 }
 0x1ce   :  { %v262_v63 = vsel %vm260_vm2, %v257_v59, 0.0 }
 0x1cf   :  { %v263_v0 = vadd.f32 %v262_v63, %v261_v61 }
 0x1d1   :  { %v265_v2 = vadd.f32 %v264_v1, %v263_v0 }
 0x1d3   :  { %v267_v4 = vadd.f32 %v266_v3, %v265_v2 }
 0x1d5   :  { %v268_v5 = vrot.slane %v267_v4, 4 }
 0x1d7   :  { %v269_v6 = vadd.f32 %v268_v5, %v267_v4 }
 0x1d9   :  { %v270_v7 = vrot.slane %v269_v6, 2 }
 0x1db   :  { %v271_v8 = vadd.f32 %v270_v7, %v269_v6 }
 0x1dd   :  { %v272_v9 = vrot.slane %v271_v8, 1 }
 0x1df   :  { %v273_v11 = vadd.f32 %v272_v9, %v271_v8 }
 0x1e1   :  { %v276_v12 = vadd.f32 %v275_v10, %v273_v11 }
 0x1e3   :  { %278 = vst.msk [vmem:[#allocation3] sm:$0x1] %vm277_vm3, %v276_v12 }
 0x1e4   :  { %342 = shalt.err (!%p339_p4)
}
 0x1e5   :  { %s343_s13 = scalar_lea.hbm %s476_s7, 16 }
 0x1e6   :  { %p344_p5 = scmp.ne.s32.totalorder %s476_s7, %s343_s13  ;;  %p347_p6 = scmp.lt.u32.totalorder %s343_s13, %s476_s7 }
 0x1e8   :  { %p349_p7 = pnand %p347_p6, %p344_p5 }
 0x1ea   :  { %352 = shalt.err (!%p349_p7)
}
 0x1eb   :  { %288 = dma.vmem_to_hbm [thread:$0]  %s286_s8, 16, %s476_s7, [#allocation4]  }
 0x1ec   :  { %353 = dma.done.wait [#allocation4], 16  }
 0x1ed   :  { %354 = vsyncadd [#allocation4], 4294967280 }
 0x1ee   :  { %292 = vsyncpa [#allocation4], 1 }

</bundles_post_ra>
